<compile_context>
chip_gen: v5e
topology: v5e:2x2
jax: 0.10.0
libtpu: 0.0.40
codegen_flags: <defaults>
</compile_context>

<pallas_src>
import functools

import jax
import jax.numpy as jnp
import numpy as np
from jax.experimental import pallas as pl
from jax.experimental.pallas import tpu as pltpu


def _round_up(x, m):
    return (x + m - 1) // m * m


def _rnn_memory_updater_kernel(
    delta_ref, x_ref, m_ref, h_ref,
    time_freq_ref, w_full_ref, b_rnn_ref, nf_b_ref,
    upd_ref, hout_ref, *, dim_hid,
):
    # --- TimeEncode: cos((ts - mem_ts) * freq), bias = 0 -----------------------
    time_feat = jnp.cos(delta_ref[...] * time_freq_ref[...])          # [T, dim_time]

    # --- one fused MXU dot over [mem_input ‖ mem ‖ time_feat ‖ h] --------------
    # w_full is block-structured: cols [:H] = RNNCell path, cols [H:] = node_feat_map.
    x_full = jnp.concatenate(
        [x_ref[...], m_ref[...], time_feat, h_ref[...]], axis=1)      # [T, K]
    y = jnp.dot(x_full, w_full_ref[...],
                preferred_element_type=jnp.float32)                   # [T, 2H]

    upd = jnp.tanh(y[:, :dim_hid] + b_rnn_ref[...])                   # RNNCell output
    upd_ref[...] = upd                                                # last_updated_memory
    hout_ref[...] = upd + y[:, dim_hid:] + nf_b_ref[...]              # combine_node_feature


def rnn_memory_updater(ts, mem_ts, mem_input, mem, h, nid, params, *, tile_n=1024):
    """Returns (h_out, last_updated_memory, last_updated_ts, last_updated_nid)."""
    N = ts.shape[0]
    dim_in = mem_input.shape[1]
    dim_hid = mem.shape[1]
    dim_nf = h.shape[1]
    dim_time = params["time_freq"].shape[1]
    K = dim_in + dim_hid + dim_time + dim_nf

    # Only remaining wrapper op: a tiny [N] elementwise delta (no pad / concat / split).
    delta = (ts - mem_ts).reshape(N, 1).astype(jnp.float32)

    # Tile: multiple of 8, >=2 grid steps when possible (v7x megacore), capped at tile_n.
    tile = max(8, min(tile_n, _round_up(pl.cdiv(N, 2), 8)))
    grid = (pl.cdiv(N, tile),)

    row = lambda d: pl.BlockSpec((tile, d), lambda i: (i, 0))
    const = lambda shape: pl.BlockSpec(shape, lambda i: (0, 0))

    cost = pl.CostEstimate(
        flops=2 * N * K * 2 * dim_hid,
        transcendentals=N * (dim_time + dim_hid),
        bytes_accessed=4 * (
            N * (1 + dim_in + dim_hid + dim_nf + 2 * dim_hid)
            + K * 2 * dim_hid + dim_time + 2 * dim_hid),
    )

    upd_mem, h_out = pl.pallas_call(
        functools.partial(_rnn_memory_updater_kernel, dim_hid=dim_hid),
        out_shape=(jax.ShapeDtypeStruct((N, dim_hid), jnp.float32),
                   jax.ShapeDtypeStruct((N, dim_hid), jnp.float32)),
        grid=grid,
        in_specs=[
            row(1),                        # delta = ts - mem_ts
            row(dim_in),                   # mem_input
            row(dim_hid),                  # mem
            row(dim_nf),                   # h (node features)
            const((1, dim_time)),          # time_freq
            const((K, 2 * dim_hid)),       # fused block-structured weight
            const((1, dim_hid)),           # b_ih + b_hh
            const((1, dim_hid)),           # node_feat_map bias
        ],
        out_specs=(row(dim_hid), row(dim_hid)),
        compiler_params=pltpu.CompilerParams(
            dimension_semantics=("parallel",),
            vmem_limit_bytes=32 * 1024 * 1024,
        ),
        cost_estimate=cost,
    )(delta,
      mem_input.astype(jnp.float32), mem.astype(jnp.float32), h.astype(jnp.float32),
      params["time_freq"], params["w_full"], params["b_rnn"], params["nf_b"])

    # Bookkeeping the PyTorch module stores on self (pure aliases — glue, not compute).
    last_updated_memory = upd_mem
    last_updated_ts = ts
    last_updated_nid = nid
    return h_out, last_updated_memory, last_updated_ts, last_updated_nid


def make_params(key, dim_in, dim_time, dim_hid, dim_node_feat):
    """Deterministic parameter init matching the module's shapes (fused + raw forms)."""
    k = jax.random.split(key, 6)
    # TimeEncode: freq = 1 / 10^linspace(0, 9, dim_time), bias = 0.
    time_freq = (1.0 / 10.0 ** np.linspace(0, 9, dim_time, dtype=np.float32)
                 ).astype(np.float32).reshape(1, dim_time)
    s = 0.1
    w_ih = jax.random.uniform(k[0], (dim_hid, dim_in + dim_time), jnp.float32, -s, s)
    w_hh = jax.random.uniform(k[1], (dim_hid, dim_hid), jnp.float32, -s, s)
    b_ih = jax.random.uniform(k[2], (1, dim_hid), jnp.float32, -s, s)
    b_hh = jax.random.uniform(k[3], (1, dim_hid), jnp.float32, -s, s)
    nf_w = jax.random.uniform(k[4], (dim_hid, dim_node_feat), jnp.float32, -s, s)
    nf_b = jax.random.uniform(k[5], (1, dim_hid), jnp.float32, -s, s)

    wx = w_ih[:, :dim_in].T          # [dim_in, H]
    wt = w_ih[:, dim_in:].T          # [dim_time, H]
    whh = w_hh.T                     # [H, H]
    wnf = nf_w.T                     # [dim_nf, H]

    # Block-structured fused weight, row order matches the in-kernel concat
    # [mem_input ‖ mem ‖ time_feat ‖ h]; col blocks: [:H]=RNNCell, [H:]=node_feat_map.
    w_rnn_col = jnp.concatenate(
        [wx, whh, wt, jnp.zeros((dim_node_feat, dim_hid), jnp.float32)], axis=0)
    w_nf_col = jnp.concatenate(
        [jnp.zeros((dim_in + dim_hid + dim_time, dim_hid), jnp.float32), wnf], axis=0)
    w_full = jnp.concatenate([w_rnn_col, w_nf_col], axis=1)   # [K, 2H]

    return {
        "time_freq": jnp.asarray(time_freq),
        # fused params used by the kernel
        "w_full": w_full,
        "b_rnn": b_ih + b_hh,
        "nf_b": nf_b,
        # raw params kept for the pure-JAX reference
        "wx": wx, "wt": wt, "whh": whh, "wnf": wnf, "b_ih": b_ih, "b_hh": b_hh,
    }


def _reference(ts, mem_ts, mem_input, mem, h, params):
    delta = (ts - mem_ts).reshape(-1, 1)
    tf = jnp.cos(delta * params["time_freq"])
    upd = jnp.tanh(mem_input @ params["wx"] + tf @ params["wt"] + params["b_ih"]
                   + mem @ params["whh"] + params["b_hh"])
    return upd + (h @ params["wnf"] + params["nf_b"]), upd


def _run_case(key, N, dim_in, dim_time, dim_hid, dim_node_feat, tile_n):
    kp, kd = jax.random.split(key)
    params = make_params(kp, dim_in, dim_time, dim_hid, dim_node_feat)

    kd = jax.random.split(kd, 5)
    ts = jax.random.uniform(kd[0], (N,), jnp.float32, 0.0, 100.0)
    mem_ts = ts - jax.random.uniform(kd[1], (N,), jnp.float32, 0.0, 10.0)
    mem_input = jax.random.normal(kd[2], (N, dim_in), jnp.float32)
    mem = jax.random.normal(kd[3], (N, dim_hid), jnp.float32)
    h = jax.random.normal(kd[4], (N, dim_node_feat), jnp.float32)
    nid = jnp.arange(N, dtype=jnp.int32)

    h_out, upd_mem, last_ts, last_nid = rnn_memory_updater(
        ts, mem_ts, mem_input, mem, h, nid, params, tile_n=tile_n)
    jax.block_until_ready((h_out, upd_mem, last_ts, last_nid))

    h_ref, upd_ref = _reference(ts, mem_ts, mem_input, mem, h, params)
    np.testing.assert_allclose(np.asarray(h_out), np.asarray(h_ref),
                               rtol=1e-5, atol=1e-5)
    np.testing.assert_allclose(np.asarray(upd_mem), np.asarray(upd_ref),
                               rtol=1e-5, atol=1e-5)
    np.testing.assert_array_equal(np.asarray(last_nid), np.asarray(nid))


if __name__ == "__main__":
    dim_in = 32         # raw mem_input dim
    dim_time = 16
    dim_hid = 32
    dim_node_feat = 24  # != dim_hid -> exercises node_feat_map Linear

    key = jax.random.PRNGKey(0)
    k1, k2, k3 = jax.random.split(key, 3)

    # Small case (tile auto-shrinks to 8, two grid steps).
    _run_case(k1, N=16, dim_in=dim_in, dim_time=dim_time,
              dim_hid=dim_hid, dim_node_feat=dim_node_feat, tile_n=1024)
    # Multi-tile case with a ragged tail (exercises pl.cdiv edge-block masking).
    _run_case(k2, N=200, dim_in=dim_in, dim_time=dim_time,
              dim_hid=dim_hid, dim_node_feat=dim_node_feat, tile_n=64)
    # Default-tile case (tile capped at round_up(cdiv(N,2),8) -> 2 grid steps).
    _run_case(k3, N=1000, dim_in=dim_in, dim_time=dim_time,
              dim_hid=dim_hid, dim_node_feat=dim_node_feat, tile_n=1024)

    print("KERNEL_OK")
</pallas_src>

<mosaic_0001>
module attributes {stable_mosaic.version = 11 : i64} {
  func.func @_rnn_memory_updater_kernel(%arg0: i32, %arg1: memref<8x1xf32, #tpu.memory_space<vmem>>, %arg2: memref<8x32xf32, #tpu.memory_space<vmem>>, %arg3: memref<8x32xf32, #tpu.memory_space<vmem>>, %arg4: memref<8x24xf32, #tpu.memory_space<vmem>>, %arg5: memref<1x16xf32, #tpu.memory_space<vmem>>, %arg6: memref<104x64xf32, #tpu.memory_space<vmem>>, %arg7: memref<1x32xf32, #tpu.memory_space<vmem>>, %arg8: memref<1x32xf32, #tpu.memory_space<vmem>>, %arg9: memref<8x32xf32, #tpu.memory_space<vmem>>, %arg10: memref<8x32xf32, #tpu.memory_space<vmem>>) attributes {dimension_semantics = [#tpu.dimension_semantics<parallel>], iteration_bounds = array<i64: 2>, scalar_prefetch = 0 : i64, scratch_operands = 0 : i64, tpu.core_type = #tpu.core_type<tc>, window_params = [{transform_indices = @transform_0, window_bounds = array<i64: 8, 1>}, {transform_indices = @transform_1, window_bounds = array<i64: 8, 32>}, {transform_indices = @transform_2, window_bounds = array<i64: 8, 32>}, {transform_indices = @transform_3, window_bounds = array<i64: 8, 24>}, {pipeline_mode = #tpu.pipeline_mode<synchronous>, transform_indices = @transform_4, window_bounds = array<i64: 1, 16>}, {pipeline_mode = #tpu.pipeline_mode<synchronous>, transform_indices = @transform_5, window_bounds = array<i64: 104, 64>}, {pipeline_mode = #tpu.pipeline_mode<synchronous>, transform_indices = @transform_6, window_bounds = array<i64: 1, 32>}, {pipeline_mode = #tpu.pipeline_mode<synchronous>, transform_indices = @transform_7, window_bounds = array<i64: 1, 32>}, {transform_indices = @transform_8, window_bounds = array<i64: 8, 32>}, {transform_indices = @transform_9, window_bounds = array<i64: 8, 32>}]} {
    %c0 = arith.constant 0 : index
    %c0_0 = arith.constant 0 : index
    %0 = vector.load %arg1[%c0, %c0_0] : memref<8x1xf32, #tpu.memory_space<vmem>>, vector<8x1xf32>
    %c0_1 = arith.constant 0 : index
    %c0_2 = arith.constant 0 : index
    %1 = vector.load %arg5[%c0_1, %c0_2] : memref<1x16xf32, #tpu.memory_space<vmem>>, vector<1x16xf32>
    %2 = vector.broadcast %0 : vector<8x1xf32> to vector<8x16xf32>
    %3 = vector.broadcast %1 : vector<1x16xf32> to vector<8x16xf32>
    %4 = arith.mulf %2, %3 : vector<8x16xf32>
    %5 = math.cos %4 : vector<8x16xf32>
    %c0_3 = arith.constant 0 : index
    %c0_4 = arith.constant 0 : index
    %6 = vector.load %arg2[%c0_3, %c0_4] : memref<8x32xf32, #tpu.memory_space<vmem>>, vector<8x32xf32>
    %c0_5 = arith.constant 0 : index
    %c0_6 = arith.constant 0 : index
    %7 = vector.load %arg3[%c0_5, %c0_6] : memref<8x32xf32, #tpu.memory_space<vmem>>, vector<8x32xf32>
    %c0_7 = arith.constant 0 : index
    %c0_8 = arith.constant 0 : index
    %8 = vector.load %arg4[%c0_7, %c0_8] : memref<8x24xf32, #tpu.memory_space<vmem>>, vector<8x24xf32>
    %9 = tpu.concatenate %6, %7, %5, %8 in 1 : vector<8x32xf32>, vector<8x32xf32>, vector<8x16xf32>, vector<8x24xf32> -> vector<8x104xf32>
    %c0_9 = arith.constant 0 : index
    %c0_10 = arith.constant 0 : index
    %10 = vector.load %arg6[%c0_9, %c0_10] : memref<104x64xf32, #tpu.memory_space<vmem>>, vector<104x64xf32>
    %cst = arith.constant dense<0.000000e+00> : vector<8x64xf32>
    %11 = tpu.matmul %9, %10, %cst {dimension_numbers = #tpu.dot_dimension_numbers<[1], [0], [0], [1], [0, 0, 1, 1], [], []>} : vector<8x104xf32>, vector<104x64xf32>, vector<8x64xf32> -> vector<8x64xf32>
    %12 = vector.extract_strided_slice %11 {offsets = [0, 0], sizes = [8, 32], strides = [1, 1]} : vector<8x64xf32> to vector<8x32xf32>
    %c0_11 = arith.constant 0 : index
    %c0_12 = arith.constant 0 : index
    %13 = vector.load %arg7[%c0_11, %c0_12] : memref<1x32xf32, #tpu.memory_space<vmem>>, vector<1x32xf32>
    %14 = vector.broadcast %13 : vector<1x32xf32> to vector<8x32xf32>
    %15 = arith.addf %12, %14 : vector<8x32xf32>
    %16 = math.tanh %15 : vector<8x32xf32>
    %c0_13 = arith.constant 0 : index
    %c0_14 = arith.constant 0 : index
    %17 = vector.load %arg9[%c0_13, %c0_14] : memref<8x32xf32, #tpu.memory_space<vmem>>, vector<8x32xf32>
    tpu.vector_store %arg9[%c0_13, %c0_14], %16 {strides = array<i32>} : memref<8x32xf32, #tpu.memory_space<vmem>>, vector<8x32xf32>,
    %18 = vector.extract_strided_slice %11 {offsets = [0, 32], sizes = [8, 32], strides = [1, 1]} : vector<8x64xf32> to vector<8x32xf32>
    %19 = arith.addf %16, %18 : vector<8x32xf32>
    %c0_15 = arith.constant 0 : index
    %c0_16 = arith.constant 0 : index
    %20 = vector.load %arg8[%c0_15, %c0_16] : memref<1x32xf32, #tpu.memory_space<vmem>>, vector<1x32xf32>
    %21 = vector.broadcast %20 : vector<1x32xf32> to vector<8x32xf32>
    %22 = arith.addf %19, %21 : vector<8x32xf32>
    %c0_17 = arith.constant 0 : index
    %c0_18 = arith.constant 0 : index
    %23 = vector.load %arg10[%c0_17, %c0_18] : memref<8x32xf32, #tpu.memory_space<vmem>>, vector<8x32xf32>
    tpu.vector_store %arg10[%c0_17, %c0_18], %22 {strides = array<i32>} : memref<8x32xf32, #tpu.memory_space<vmem>>, vector<8x32xf32>,
    return
  }
  func.func @transform_0(%arg0: i32) -> (i32, i32) {
    %c0_i32 = arith.constant 0 : i32
    %c0_i32_0 = arith.constant 0 : i32
    return %arg0, %c0_i32 : i32, i32
  }
  func.func @transform_1(%arg0: i32) -> (i32, i32) {
    %c0_i32 = arith.constant 0 : i32
    %c0_i32_0 = arith.constant 0 : i32
    return %arg0, %c0_i32 : i32, i32
  }
  func.func @transform_2(%arg0: i32) -> (i32, i32) {
    %c0_i32 = arith.constant 0 : i32
    %c0_i32_0 = arith.constant 0 : i32
    return %arg0, %c0_i32 : i32, i32
  }
  func.func @transform_3(%arg0: i32) -> (i32, i32) {
    %c0_i32 = arith.constant 0 : i32
    %c0_i32_0 = arith.constant 0 : i32
    return %arg0, %c0_i32 : i32, i32
  }
  func.func @transform_4(%arg0: i32) -> (i32, i32) {
    %c0_i32 = arith.constant 0 : i32
    %c0_i32_0 = arith.constant 0 : i32
    %c0_i32_1 = arith.constant 0 : i32
    return %c0_i32, %c0_i32_0 : i32, i32
  }
  func.func @transform_5(%arg0: i32) -> (i32, i32) {
    %c0_i32 = arith.constant 0 : i32
    %c0_i32_0 = arith.constant 0 : i32
    %c0_i32_1 = arith.constant 0 : i32
    return %c0_i32, %c0_i32_0 : i32, i32
  }
  func.func @transform_6(%arg0: i32) -> (i32, i32) {
    %c0_i32 = arith.constant 0 : i32
    %c0_i32_0 = arith.constant 0 : i32
    %c0_i32_1 = arith.constant 0 : i32
    return %c0_i32, %c0_i32_0 : i32, i32
  }
  func.func @transform_7(%arg0: i32) -> (i32, i32) {
    %c0_i32 = arith.constant 0 : i32
    %c0_i32_0 = arith.constant 0 : i32
    %c0_i32_1 = arith.constant 0 : i32
    return %c0_i32, %c0_i32_0 : i32, i32
  }
  func.func @transform_8(%arg0: i32) -> (i32, i32) {
    %c0_i32 = arith.constant 0 : i32
    %c0_i32_0 = arith.constant 0 : i32
    return %arg0, %c0_i32 : i32, i32
  }
  func.func @transform_9(%arg0: i32) -> (i32, i32) {
    %c0_i32 = arith.constant 0 : i32
    %c0_i32_0 = arith.constant 0 : i32
    return %arg0, %c0_i32 : i32, i32
  }
}

</mosaic_0001>

<bundles_post_ra>
// kernel: tpu_custom_call.1
= control target key start
LH: loop header
LB: loop body
LE: loop exit
PB: predicated region body
PF: predicated region fallthrough
CT: control target
= control target key end

     0   :  { %s1276_s0 = inlined_call_operand.vmem [shape: f32[16,1], index: 0, kind: input, shape index: {}]   ;;  %s1277_s1 = inlined_call_operand.vmem [shape: f32[16,32], index: 1, kind: input, shape index: {}]   ;;  %s1278_s2 = inlined_call_operand.vmem [shape: f32[16,32], index: 2, kind: input, shape index: {}]   ;;  %s1279_s3 = inlined_call_operand.vmem [shape: f32[16,24], index: 3, kind: input, shape index: {}]   ;;  %s1280_s4 = inlined_call_operand.vmem [shape: f32[1,16], index: 4, kind: input, shape index: {}]   ;;  %s1281_s5 = inlined_call_operand.vmem [shape: f32[104,64], index: 5, kind: input, shape index: {}]   ;;  %s1282_s6 = inlined_call_operand.vmem [shape: f32[1,32], index: 6, kind: input, shape index: {}]   ;;  %s1283_s7 = inlined_call_operand.vmem [shape: f32[1,32], index: 7, kind: input, shape index: {}]   ;;  %s1284_s8 = inlined_call_operand.hbm [shape: f32[16,32], index: 8, kind: output, shape index: {0}]   ;;  %s1285_s9 = inlined_call_operand.hbm [shape: f32[16,32], index: 9, kind: output, shape index: {1}]  }
   0x1   :  { %1287 = sst [smem:[#allocation8_spill]] %s1276_s0 }
   0x2   :  { %1288 = sst [smem:[#allocation9_spill]] %s1277_s1 }
   0x3   :  { %1289 = sst [smem:[#allocation10_spill]] %s1278_s2 }
   0x4   :  { %1290 = sst [smem:[#allocation11_spill]] %s1279_s3 }
   0x5   :  { %15 = vsyncpa [#allocation3], 0 }
   0x6   :  { %17 = vsyncpa [#allocation3 + $0x1], 0 }
   0x7   :  { %18 = vsyncpa [#allocation5], 0 }
   0x8   :  { %20 = vsyncpa [#allocation5 + $0x1], 0  ;;  %s1032_s30 = smov 0   ;;  %s1034_s10 = smov 0  }
   0x9   :  { %s1036_s11 = smov 0   ;;  %s1038_s12 = smov 0  }
   0xa LB: > { %s1053_s13 = sadd.s32 4294967295, %s969_s12   ;;  %s794_s14 = sadd.s32 4294967294, %s969_s12   ;;  %s969_s12 = sphi %s1038_s12, %s1303_s12   ;;  %s965_s11 = sphi %s1036_s11, %s1302_s11   ;;  %s961_s10 = sphi %s1034_s10, %s1301_s10   ;;  %s957_s30 = sphi %s1032_s30, %s1300_s30  }
   0xb   : > { %s1057_s15 = sadd.s32 1, %s969_s12   ;;  %s221_s16 = sadd.s32 1, %s965_s11 }
   0xc   : > { %s218_s17 = ssub.s32 %s969_s12, %s1057_s15  ;;  %p231_p0 = scmp.ne.s32.totalorder %s965_s11, %s961_s10 }
   0xd   : > { %p219_p1 = scmp.eq.s32.totalorder %s218_s17, 0  ;;  %p232_p2 = scmp.eq.s32.totalorder %s1053_s13, 1 }
   0xe   : > { %p237_p3 = scmp.ne.s32.totalorder %s961_s10, %s957_s30  ;;  %p238_p4 = scmp.eq.s32.totalorder %s794_s14, 1 }
   0xf   : > { %s1068_s18 = scalar_select %p219_p1, %s965_s11, %s221_s16  }
  0x10   : > { %p1070_p5 = por %p232_p2, %p231_p0  ;;  %p1074_p6 = por %p238_p4, %p237_p3 }
  0x11   : > { %p797_p7 = scmp.ge.s32.totalorder %s969_s12, 1  ;;  %p322_p8 = scmp.lt.s32.totalorder %s969_s12, 3 }
  0x13   : > { %p323_p9 = pnand %p797_p7, %p322_p8 }
  0x14   : > { %p374_p10 = scmp.lt.s32.totalorder (!%p323_p9), %s1053_s13, 1  ;;  %s1293_s0 = sld [smem:[#allocation8_spill]] (!%p323_p9) }
  0x15   : > { %326 = sbr.rel (%p323_p9) target bundleno = 592 (0x250), region = 52  ;;  %s1294_s2 = sld [smem:[#allocation10_spill]] (!%p323_p9) }
  0x16   : > { %s972_s29 = smov (!%p323_p9), 32   ;;  %s979_s26 = smov (!%p323_p9), 64  }
  0x17   : > { %s1297_s3 = sld [smem:[#allocation11_spill]] (!%p323_p9)  ;;  %s980_s14 = smov (!%p323_p9), 80  }
  0x18   : > { %s1298_s1 = sld [smem:[#allocation9_spill]] (!%p323_p9)  ;;  %s1218_s24 = sand.u32 (!%p323_p9), 1, %s961_s10  }
  0x1a   : > { %v971_v0 = vmov 0   ;;  %s375_s21 = scalar_select %p374_p10, %s1053_s13, 1  ;;  %v870_v3 = vld [vmem:[%s1280_s4] ss:$0 sm:$0xff]  ;;  %v973_v17 = vmov 2102212464  }
  0x1b   : > { %869 = vset.pattern.permute.xlu0 %v971_v0  ;;  %v974_v19 = vmov 920167782   ;;  %v975_v22 = vmov 1326507024   ;;  %v976_v24 = vmov 683565275  }
  0x1c   : > { %s1083_s22 = sshll.u32 %s375_s21, 3  ;;  %v977_v26 = vmov 2475754826   ;;  %v978_v29 = vmov 2131351028   ;;  %s632_s21 = scalar_lea.sflag [#allocation3], %s1218_s24 }
  0x1d   : > { %s377_s25 = scalar_lea.vmem %s1293_s0, %s1083_s22  ;;  %s385_s28 = scalar_lea.vmem %s1294_s2, %s1083_s22 }
  0x1e   : > { %v390_v1 = vld [vmem:[%s377_s25] sm:$0xff]  ;;  %s381_s17 = scalar_lea.vmem %s1298_s1, %s1083_s22  ;;  %s981_s25 = smov 96  }
  0x1f   : > { %394 = vperm.xlu0 %869, %v390_v1   ;;  %v556_v2 = vld [vmem:[%s385_s28] sm:$0xff]  ;;  %s895_s28 = scalar_lea.hbm %s1284_s8, 16 }
  0x27   : > { %559 = vrot.lane.b32.xlu0 %v556_v2, %s972_s29  ;;  %s389_s29 = scalar_lea.vmem %s1297_s3, %s1083_s22  ;;  %s1286_s22 = sshll.u32 %s1053_s13, 3 }
  0x91   : > { %v395_v4 = vpop.permute.xlu0 %394 }
  0x92   : > { %v1096_v5 = vmul.f32 %v870_v3, %v395_v4 }
  0x94   : > { %v404_v6 = vand.u32 2139095040, %v1096_v5  ;;  %v401_v9 = vand.u32 2147483647, %v1096_v5  ;;  %vm403_vm12 = vcmp.lt.s32.totalorder %v1096_v5, 0 }
  0x96   : > { %v405_v7 = vshrl.u32 %v404_v6, 23  ;;  %v408_v11 = vand.u32 8388607, %v401_v9  ;;  %vm1158_vm13 = vcmp.le.f32.partialorder %v401_v9, 0.7853982  ;;  %v585_v9 = vld [vmem:[%s1281_s5 + $0x48] sm:$0xff] }
  0x98   : > { %v804_v8 = vadd.s32 4294967169, %v405_v7  ;;  %v409_v15 = vor.u32 8388608, %v408_v11 }
  0x9a   : > { %v411_v10 = vadd.s32 1, %v804_v8  ;;  %v1111_v36 = vshll.u32 %v409_v15, 8 }
  0x9c   : > { %vm412_vm0 = vcmp.gt.s32.totalorder %v411_v10, 0  ;;  %v450_v46 = vand.u32 65535, %v1111_v36  ;;  %v451_v48 = vshrl.u32 %v1111_v36, 16 }
  0x9d   : > { %v413_v12 = vsel %vm412_vm0, %v411_v10, 0 }
  0x9e   : > { %v415_v13 = vand.u32 31, %v413_v12  ;;  %v1104_v16 = vshrl.u32 %v413_v12, 5 }
  0xa0   : > { %v1102_v14 = vsub.s32 32, %v415_v13  ;;  %v427_v18 = vshll.u32 %v973_v17, %v415_v13  ;;  %v430_v20 = vshll.u32 %v974_v19, %v415_v13  ;;  %v418_v25 = vshll.u32 %v976_v24, %v415_v13 }
  0xa1   : > { %v421_v28 = vshll.u32 %v977_v26, %v415_v13  ;;  %v424_v31 = vshll.u32 %v978_v29, %v415_v13  ;;  %vm436_vm1 = vcmp.lt.s32.totalorder %v1104_v16, 4  ;;  %vm433_vm2 = vcmp.lt.s32.totalorder %v1104_v16, 1 }
  0xa2   : > { %v428_v21 = vshrl.u32 %v974_v19, %v1102_v14  ;;  %v431_v23 = vshrl.u32 %v975_v22, %v1102_v14  ;;  %v419_v27 = vshrl.u32 %v977_v26, %v1102_v14  ;;  %v422_v30 = vshrl.u32 %v978_v29, %v1102_v14 }
  0xa3   : > { %v425_v32 = vshrl.u32 %v973_v17, %v1102_v14  ;;  %vm435_vm3 = vcmp.lt.s32.totalorder %v1104_v16, 3  ;;  %vm434_vm4 = vcmp.lt.s32.totalorder %v1104_v16, 2  ;;  %v417_v10 = vshrl.u32 %v976_v24, %v1102_v14 }
  0xa4   : > { %v429_v33 = vor.u32 %v428_v21, %v427_v18  ;;  %v432_v34 = vor.u32 %v431_v23, %v430_v20  ;;  %v420_v35 = vor.u32 %v419_v27, %v418_v25  ;;  %v423_v37 = vor.u32 %v422_v30, %v421_v28 }
  0xa5   : > { %v426_v38 = vor.u32 %v425_v32, %v424_v31 }
  0xa6   : > { %v442_v39 = vsel %vm436_vm1, %v429_v33, 920167782  ;;  %v446_v40 = vsel %vm436_vm1, %v432_v34, 1326507024  ;;  %v441_v41 = vsel %vm433_vm2, %v420_v35, %v423_v37  ;;  %v437_v18 = vsel %vm433_vm2, %v417_v10, %v420_v35 }
  0xa7   : > { %v443_v42 = vsel %vm435_vm3, %v426_v38, %v442_v39  ;;  %v445_v43 = vsel %vm433_vm2, %v423_v37, %v426_v38  ;;  %v447_v45 = vsel %vm435_vm3, %v429_v33, %v446_v40  ;;  %v438_v6 = vsel %vm436_vm1, %v426_v38, 2102212464 }
  0xa8   : > { %v444_v44 = vsel %vm434_vm4, %v441_v41, %v443_v42  ;;  %v448_v47 = vsel %vm434_vm4, %v445_v43, %v447_v45  ;;  %v439_v19 = vsel %vm435_vm3, %v423_v37, %v438_v6  ;;  %vm544_vm1 = vweird.f32 %v1096_v5 }
  0xa9   : > { %v474_v49 = vand.u32 65535, %v444_v44  ;;  %v475_v50 = vshrl.u32 %v444_v44, 16  ;;  %v452_v51 = vand.u32 65535, %v448_v47  ;;  %v453_v52 = vshrl.u32 %v448_v47, 16 }
  0xaa   : > { %v440_v24 = vsel %vm434_vm4, %v437_v18, %v439_v19  ;;  %vm570_vm2 = vcmask 261120   ;;  %vm572_vm3 = vcmask 523264   ;;  %vm574_vm4 = vcmask 654336  }
  0xab   : > { %v477_v53 = vmul.u32 %v475_v50, %v450_v46  ;;  %v478_v54 = vmul.u32 %v474_v49, %v451_v48  ;;  %v455_v55 = vmul.u32 %v453_v52, %v450_v46  ;;  %v456_v56 = vmul.u32 %v452_v51, %v451_v48 }
  0xac   : > { %v476_v57 = vmul.u32 %v474_v49, %v450_v46  ;;  %v454_v59 = vmul.u32 %v452_v51, %v450_v46  ;;  %v479_v61 = vmul.u32 %v475_v50, %v451_v48  ;;  %v457_v62 = vmul.u32 %v453_v52, %v451_v48 }
  0xad   : > { %v480_v58 = vshll.u32 %v477_v53, 16  ;;  %v458_v60 = vshll.u32 %v455_v55, 16  ;;  %v482_v63 = vshll.u32 %v478_v54, 16  ;;  %v460_v2 = vshll.u32 %v456_v56, 16 }
  0xae   : > { %v481_v15 = vshrl.u32 %v477_v53, 16  ;;  %v459_v20 = vshrl.u32 %v455_v55, 16  ;;  %v483_v22 = vshrl.u32 %v478_v54, 16  ;;  %v461_v25 = vshrl.u32 %v456_v56, 16  ;;  %v588_v53 = vld [vmem:[%s1281_s5 + $0x60] sm:$0xff]  ;;  %v587_v54 = vld [vmem:[%s1281_s5 + $0x58] sm:$0xff] }
  0xaf   : > { %vm484_vm5 = vc.u32 %v476_v57, %v480_v58  ;;  %v486_v1 = vadd.s32 %v480_v58, %v476_v57  ;;  %vm462_vm6 = vc.u32 %v454_v59, %v458_v60  ;;  %v464_v3 = vadd.s32 %v458_v60, %v454_v59  ;;  %596 = vmatpush.msra.mxu0 %v588_v53  ;;  %v586_v58 = vld [vmem:[%s1281_s5 + $0x50] sm:$0xff] }
  0xb0   : > { %v485_v4 = vsel %vm484_vm5, 1, %v971_v0  ;;  %v463_v7 = vsel %vm462_vm6, 1, %v971_v0  ;;  %v494_v29 = vmul.u32 %v1111_v36, %v440_v24  ;;  %vm589_vm5 = vcmask 850944  }
  0xb1   : > { %v487_v8 = vadd.s32 %v485_v4, %v479_v61  ;;  %vm488_vm7 = vc.u32 %v486_v1, %v482_v63  ;;  %v465_v11 = vadd.s32 %v463_v7, %v457_v62  ;;  %vm466_vm8 = vc.u32 %v464_v3, %v460_v2  ;;  %597 = vmatpush.msra.mxu0 %v587_v54  ;;  %v583_v3 = vld [vmem:[%s1281_s5 + $0x38] sm:$0xff] }
  0xb2   : > { %v489_v12 = vsel %vm488_vm7, 1, %v971_v0  ;;  %v467_v13 = vsel %vm466_vm8, 1, %v971_v0  ;;  %v490_v0 = vadd.s32 %v486_v1, %v482_v63  ;;  %v584_v63 = vld [vmem:[%s1281_s5 + $0x40] sm:$0xff] }
  0xb3   : > { %v491_v17 = vadd.s32 %v489_v12, %v487_v8  ;;  %v469_v21 = vadd.s32 %v467_v13, %v465_v11  ;;  %598 = vmatpush.msra.mxu0 %v586_v58  ;;  %v582_v8 = vld [vmem:[%s1281_s5 + $0x30] sm:$0xff]  ;;  %v581_v12 = vld [vmem:[%s1281_s5 + $0x28] sm:$0xff] }
  0xb5   : > { %v492_v23 = vadd.s32 %v491_v17, %v481_v15  ;;  %v470_v14 = vadd.s32 %v469_v21, %v459_v20  ;;  %599 = vmatpush.msra.mxu0 %v585_v9 }
  0xb7   : > { %v493_v26 = vadd.s32 %v492_v23, %v483_v22  ;;  %v471_v27 = vadd.s32 %v470_v14, %v461_v25  ;;  %600 = vmatpush.msra.mxu0 %v584_v63 }
  0xb9   : > { %v497_v28 = vadd.s32 1, %v493_v26  ;;  %vm496_vm9 = vc.u32 %v471_v27, %v490_v0  ;;  %v495_v41 = vadd.s32 %v490_v0, %v471_v27  ;;  %601 = vmatpush.msra.mxu0 %v583_v3  ;;  %v557_v27 = vld [vmem:[%s389_s29] sm:$0xff]  ;;  %s647_s29 = scalar_lea.hbm %s1284_s8, %s1286_s22 }
  0xba   : > { %v580_v0 = vld [vmem:[%s1281_s5 + $0x20] sm:$0xff] }
  0xbb   : > { %v498_v30 = vsel %vm496_vm9, %v497_v28, %v493_v26  ;;  %602 = vmatpush.msra.mxu0 %v582_v8  ;;  %v578_v28 = vld [vmem:[%s1281_s5 + $0x10] sm:$0xff] }
  0xbc   : > { %v499_v31 = vadd.s32 %v498_v30, %v494_v29  ;;  %v577_v29 = vld [vmem:[%s1281_s5 + $0x8] sm:$0xff]  ;;  %v576_v30 = vld [vmem:[%s1281_s5] sm:$0xff] }
  0xbd   : > { %603 = vmatpush.msra.mxu0 %v581_v12 }
  0xbe   : > { %v500_v32 = vadd.s32 536870912, %v499_v31 }
  0xbf   : > { %604 = vmatpush.msra.mxu0 %v580_v0 }
  0xc0   : > { %v501_v33 = vshrl.u32 %v500_v32, 30  ;;  %v555_v32 = vld [vmem:[%s381_s17] sm:$0xff]  ;;  %s651_s17 = sshll.u32 %s647_s29, 4  ;;  %s652_s17 = int_to_ptr.hbm [resolvable:$true] %s651_s17 }
  0xc1   : > { %s889_s23 = sshra.s32 %s652_s17, 4  ;;  %s890_s23 = int_to_ptr.hbm [resolvable:$true] %s889_s23 }
  0xc2   : > { %v502_v34 = vshll.u32 %v501_v33, 30  ;;  %v525_v62 = vsub.s32 4, %v501_v33  ;;  %p896_p0 = scmp.lt.s32.totalorder %s890_s23, %s1284_s8 }
  0xc4   : > { %v503_v35 = vsub.s32 %v499_v31, %v502_v34  ;;  %v526_v7 = vsel %vm403_vm12, %v525_v62, %v501_v33  ;;  %v560_v33 = vpop.permute.xlu0 %559 }
  0xc5   : > { %v528_v13 = vsel %vm1158_vm13, 0, %v526_v7  ;;  %v571_v34 = vsel %vm570_vm2, %v555_v32, %v560_v33 }
  0xc6   : > { %vm504_vm10 = vcmp.lt.s32.totalorder %v503_v35, 0  ;;  %v505_v37 = vsub.s32 0, %v503_v35  ;;  %v545_v20 = vand.u32 3, %v528_v13 }
  0xc8   : > { %v506_v38 = vsel %vm504_vm10, %v505_v37, %v503_v35  ;;  %vm547_vm14 = vcmp.eq.s32.totalorder %v545_v20, 0  ;;  %vm550_vm15 = vcmp.eq.s32.totalorder %v545_v20, 2  ;;  %vm546_vm0 = vcmp.lt.s32.totalorder %v545_v20, 2 }
  0xc9   : > { %v507_v39 = vclz %v506_v38 }
  0xcb   : > { %v805_v40 = vadd.s32 4294967294, %v507_v39  ;;  %v871_v39 = vld [vmem:[%s1282_s6] ss:$0 sm:$0xff] }
  0xcd   : > { %vm806_vm11 = vcmp.lt.s32.totalorder %v805_v40, 0 }
  0xce   : > { %v510_v16 = vsel %vm806_vm11, 0, %v805_v40 }
  0xcf   : > { %v511_v42 = vsub.s32 32, %v510_v16  ;;  %v515_v43 = vsub.s32 4294967266, %v510_v16  ;;  %v512_v44 = vshll.u32 %v503_v35, %v510_v16 }
  0xd1   : > { %v513_v45 = vshrl.u32 %v495_v41, %v511_v42  ;;  %v516_v36 = vadd.s32 127, %v515_v43 }
  0xd3   : > { %v514_v46 = vor.u32 %v513_v45, %v512_v44  ;;  %v517_v47 = vshll.u32 %v516_v36, 23 }
  0xd5   : > { %v518_v48 = vor.u32 4788187, %v517_v47  ;;  %v521_v50 = vcvt.s32.f32 %v514_v46 }
  0xd7   : > { %v519_v49 = vand.u32 2147483647, %v518_v48 }
  0xd9   : > { %v522_v51 = vmul.f32 %v521_v50, %v519_v49 }
  0xdb   : > { %v523_v52 = vxor.u32 2147483648, %v522_v51 }
  0xdd   : > { %v524_v56 = vsel %vm403_vm12, %v523_v52, %v522_v51 }
  0xde   : > { %v527_v57 = vsel %vm1158_vm13, %v1096_v5, %v524_v56  ;;  %v579_v5 = vld [vmem:[%s1281_s5 + $0x18] sm:$0xff] }
  0xdf   : > { %v529_v59 = vmul.f32 %v527_v57, %v527_v57  ;;  %605 = vmatpush.msra.mxu0 %v579_v5 }
  0xe1   : > { %v530_v60 = vmul.f32 -0.001358992, %v529_v59  ;;  %v537_v61 = vmul.f32 -0.00019511016, %v529_v59  ;;  %606 = vmatpush.msra.mxu0 %v578_v28 }
  0xe3   : > { %v531_v1 = vadd.f32 0.041655596, %v530_v60  ;;  %v538_v2 = vadd.f32 0.008332121, %v537_v61  ;;  %607 = vmatpush.msra.mxu0 %v577_v29 }
  0xe5   : > { %v532_v4 = vmul.f32 %v531_v1, %v529_v59  ;;  %v539_v6 = vmul.f32 %v538_v2, %v529_v59  ;;  %608 = vmatpush.msra.mxu0 %v576_v30 }
  0xe7   : > { %v533_v10 = vadd.f32 -0.4999988, %v532_v4  ;;  %v540_v11 = vadd.f32 -0.16666654, %v539_v6 }
  0xe9   : > { %v534_v15 = vmul.f32 %v533_v10, %v529_v59  ;;  %v541_v17 = vmul.f32 %v540_v11, %v529_v59 }
  0xeb   : > { %v535_v18 = vadd.f32 1.0, %v534_v15  ;;  %v542_v19 = vadd.f32 1.0, %v541_v17 }
  0xed   : > { %v543_v21 = vmul.f32 %v542_v19, %v527_v57  ;;  %v551_v22 = vxor.u32 2147483648, %v535_v18 }
  0xef   : > { %v548_v23 = vxor.u32 2147483648, %v543_v21  ;;  %v552_v14 = vsel %vm550_vm15, %v551_v22, %v543_v21 }
  0xf1   : > { %v549_v25 = vsel %vm547_vm14, %v535_v18, %v548_v23 }
  0xf2   : > { %v553_v24 = vsel %vm546_vm0, %v549_v25, %v552_v14 }
  0xf3   : > { %v554_v26 = vsel %vm544_vm1, nan, %v553_v24 }
  0xf4   : > { %563 = vrot.lane.b32.xlu1 %v554_v26, %s979_s26  ;;  %s798_s26 = sshll.u32 %s1218_s24, 3 }
  0xfc   : > { %567 = vrot.lane.b32.xlu1 %v557_v27, %s980_s14  ;;  %s366_s14 = scalar_lea.vmem [#allocation2], %s798_s26 }
  0xfd   : > { %s649_s16 = sshll.u32 %s366_s14, 4  ;;  %s650_s16 = int_to_ptr.vmem [resolvable:$true] %s649_s16 }
 0x166   : > { %v564_v31 = vpop.permute.xlu1 %563 }
 0x167   : > { %v573_v35 = vsel %vm572_vm3, %v571_v34, %v564_v31 }
 0x16e   : > { %v568_v37 = vpop.permute.xlu1 %567 }
 0x16f   : > { %v575_v38 = vsel %vm574_vm4, %v573_v35, %v568_v37 }
 0x170   : > { %807 = vmatmul.msk.f32.vlgmr.msra.gmra.mxu0 %vm589_vm5, %v575_v38 }
 0x1ed   : > { %v610_v40 = vpop.f32.mrf.mxu0 }
 0x1ee   : > { %v617_v16 = vadd.f32 %v871_v39, %v610_v40  ;;  %621 = vrot.lane.b32.xlu2 %v610_v40, %s981_s25  ;;  %s891_s25 = scalar_lea.hbm %s890_s23, 8 }
 0x1ef   : > { %p892_p11 = scmp.ne.s32.totalorder %s890_s23, %s891_s25  ;;  %p897_p1 = scmp.lt.s32.totalorder %s895_s28, %s891_s25 }
 0x1f0   : > { %873 = vtanh.f32 %v617_v16 }
 0x1f1   : > { %p893_p12 = pnand %p892_p11, %p1070_p5  ;;  %p898_p2 = por %p897_p1, %p896_p0 }
 0x1f3   : > { %p894_p13 = pneg %p893_p12 }
 0x1f5   : > { %p899_p3 = pnand %p898_p2, %p894_p13 }
 0x1f6   : > { %v874_v41 = vpop.eup %873 }
 0x1f7   : > { %619 = vst.msk [vmem:[%s366_s14] sm:$0xff] %vm570_vm2, %v874_v41 }
 0x1f8   : > { %902 = shalt.err (!%p899_p3)
}
 0x1f9   : > { %814 = dma.vmem_to_hbm [thread:$0]  (%p1070_p5), %s650_s16, 128, %s652_s17, %s632_s21   ;;  %v872_v42 = vld [vmem:[%s1283_s7] ss:$0 sm:$0xff] }
 0x1fa   : > { %s1299_s29 = sshll.u32 %s1053_s13, 3  ;;  %s373_s1 = scalar_lea.vmem [#allocation4], %s798_s26 }
 0x1fb   : > { %s661_s3 = scalar_lea.hbm %s1285_s9, %s1299_s29  ;;  %s663_s22 = sshll.u32 %s373_s1, 4  ;;  %s664_s22 = int_to_ptr.vmem [resolvable:$true] %s663_s22 }
 0x1fc   : > { %s665_s23 = sshll.u32 %s661_s3, 4  ;;  %s637_s13 = scalar_lea.sflag [#allocation5], %s1218_s24  ;;  %s666_s23 = int_to_ptr.hbm [resolvable:$true] %s665_s23 }
 0x1fd   : > { %s917_s16 = sshra.s32 %s666_s23, 4  ;;  %s923_s26 = scalar_lea.hbm %s1285_s9, 16  ;;  %s918_s16 = int_to_ptr.hbm [resolvable:$true] %s917_s16 }
 0x1fe   : > { %s919_s2 = scalar_lea.hbm %s918_s16, 8  ;;  %p924_p9 = scmp.lt.s32.totalorder %s918_s16, %s1285_s9 }
 0x1ff   : > { %p920_p4 = scmp.ne.s32.totalorder %s918_s16, %s919_s2  ;;  %p925_p10 = scmp.lt.s32.totalorder %s923_s26, %s919_s2 }
 0x201   : > { %p921_p7 = pnand %p920_p4, %p1070_p5  ;;  %p926_p11 = por %p925_p10, %p924_p9 }
 0x203   : > { %p922_p8 = pneg %p921_p7 }
 0x205   : > { %p927_p12 = pnand %p926_p11, %p922_p8 }
 0x248   : > { %v622_v43 = vpop.permute.xlu2 %621 }
 0x249   : > { %v624_v44 = vadd.f32 %v874_v41, %v622_v43 }
 0x24b   : > { %v629_v45 = vadd.f32 %v872_v42, %v624_v44 }
 0x24d   : > { %630 = vst.msk [vmem:[%s373_s1] sm:$0xff] %vm570_vm2, %v629_v45 }
 0x24e   : > { %930 = shalt.err (!%p927_p12)
}
 0x24f   : > { %815 = dma.vmem_to_hbm [thread:$0]  (%p1070_p5), %s664_s22, 128, %s666_s23, %s637_s13  }
 0x250 PF: > { %p825_p13 = scmp.ge.s32.totalorder %s969_s12, 2  ;;  %s677_s24 = sand.u32 1, %s957_s30  }
 0x251   : > { %s678_s28 = scalar_lea.sflag [#allocation3], %s677_s24 }
 0x252   : > { %p819_p0 = pnand %p825_p13, %p1074_p6 }
 0x254   : > { %p820_p1 = pneg %p819_p0 }
 0x256   : > { %948 = dma.done.wait (%p820_p1), %s678_s28, 128  }
 0x257   : > { %950 = vsyncadd (%p820_p1), %s678_s28, 4294967168  ;;  %s688_s29 = scalar_lea.sflag [#allocation5], %s677_s24 }
 0x258   : > { %952 = dma.done.wait (%p820_p1), %s688_s29, 128  }
 0x259   : > { %954 = vsyncadd (%p820_p1), %s688_s29, 4294967168  ;;  %p23_p5 = scmp.ge.s32.totalorder %s1057_s15, 4   ;;  %s1300_s30 = smov %s961_s10 }
 0x25a   : > { %s1301_s10 = smov %s965_s11  ;;  %s1302_s11 = smov %s1068_s18 }
 0x25b   : > { %s1303_s12 = smov %s1057_s15  ;;  %25 = sbr.rel (!%p23_p5) target bundleno = 10 (0xa), region = 113 }
 0x260   :  { %694 = vsyncpa [#allocation3], 1 }
 0x261   :  { %696 = vsyncpa [#allocation3 + $0x1], 1 }
 0x262   :  { %697 = vsyncpa [#allocation5], 1 }
 0x263   :  { %699 = vsyncpa [#allocation5 + $0x1], 1 }

</bundles_post_ra>
